<compile_context>
chip_gen: v7x
topology: tpu7x:2x2x1
jax: 0.10.0
libtpu: 0.0.40
codegen_flags: <defaults>
</compile_context>

<pallas_src>
import functools

import jax
import jax.numpy as jnp
import numpy as np
from jax.experimental import pallas as pl
from jax.experimental.pallas import tpu as pltpu


def _round_up(x, m):
    return ((x + m - 1) // m) * m


def _mle_kernel(idx_ref, tables_ref, pos_table_ref, *refs, num_levels,
                d_content, d_embedding, eps, partitioned, has_extra):
    if has_extra:
        extra_ref, gamma_ref, beta_ref, out_ref, timing_ref = refs
    else:
        gamma_ref, beta_ref, out_ref, timing_ref = refs

    tile_t = idx_ref.shape[0]

    # ---- content annotations: sum_l Embedding_l(x_l), as one-hot @ table (MXU)
    vocab = tables_ref.shape[1]
    lane_v = jax.lax.broadcasted_iota(jnp.int32, (tile_t, vocab), 1)
    content = jnp.zeros((tile_t, d_content), jnp.float32)
    for lvl in range(num_levels):
        ids = idx_ref[:, lvl:lvl + 1]                      # (tile_t, 1) int32
        onehot = (lane_v == ids).astype(jnp.float32)       # (tile_t, V)
        content = content + jnp.dot(onehot, tables_ref[lvl],
                                    preferred_element_type=jnp.float32)
    # TODO(synk): FeatureDropout / emb_dropouts / extra_content_dropout are
    # eval-mode identities here; torch train-mode RNG is not reproducible.
    if has_extra:
        content = content + extra_ref[...].astype(jnp.float32)

    # ---- timing signal: position_table[pos], as one-hot @ table (MXU)
    max_len = pos_table_ref.shape[0]
    pos = idx_ref[:, num_levels:num_levels + 1]            # (tile_t, 1) int32
    lane_p = jax.lax.broadcasted_iota(jnp.int32, (tile_t, max_len), 1)
    onehot_p = (lane_p == pos).astype(jnp.float32)
    timing = jnp.dot(onehot_p, pos_table_ref[...],
                     preferred_element_type=jnp.float32)
    timing_ref[...] = timing.astype(timing_ref.dtype)
    # TODO(synk): timing_dropout / final FeatureDropout omitted (eval identity).

    gamma = gamma_ref[...].astype(jnp.float32)             # (1, d_embedding)
    beta = beta_ref[...].astype(jnp.float32)
    d = d_embedding

    if partitioned:
        # annotations = concat([content, timing], -1); LayerNorm of the
        # concatenation computed from the two halves (no in-kernel concat).
        total = (jnp.sum(content, axis=-1, keepdims=True) +
                 jnp.sum(timing, axis=-1, keepdims=True))
        mu = total * (1.0 / d)
        cc = content - mu
        ct = timing - mu
        ss = (jnp.sum(cc * cc, axis=-1, keepdims=True) +
              jnp.sum(ct * ct, axis=-1, keepdims=True))
        sigma = jnp.sqrt(ss * (1.0 / (d - 1)))             # torch.std (unbiased)
        inv = 1.0 / (sigma + eps)                          # per-row scalar column
        out_ref[:, :d_content] = (
            cc * inv * gamma[:, :d_content] + beta[:, :d_content]
        ).astype(out_ref.dtype)
        out_ref[:, d_content:] = (
            ct * inv * gamma[:, d_content:] + beta[:, d_content:]
        ).astype(out_ref.dtype)
    else:
        ann = content + timing
        mu = jnp.mean(ann, axis=-1, keepdims=True)
        c = ann - mu
        sigma = jnp.sqrt(jnp.sum(c * c, axis=-1, keepdims=True) * (1.0 / (d - 1)))
        inv = 1.0 / (sigma + eps)
        out_ref[...] = (c * inv * gamma + beta).astype(out_ref.dtype)


def multi_level_embedding(xs, emb_tables, position_table, seq_lens, *,
                          partitioned, gamma, beta,
                          extra_content_annotations=None,
                          eps=1e-3, tile_t=128):
    """Eval-mode MultiLevelEmbedding forward. Returns (annotations, timing)."""
    num_levels = len(xs)
    assert len(emb_tables) == num_levels and num_levels >= 1
    d_content = int(emb_tables[0].shape[1])
    d_pos_width = int(position_table.shape[1])
    if partitioned:
        d_embedding = d_content + d_pos_width
    else:
        assert d_pos_width == d_content
        d_embedding = d_content
    assert d_embedding > 1
    assert gamma.shape == (d_embedding,) and beta.shape == (d_embedding,)

    # Host-side replacement for batch_idxs: per-token position within sequence.
    positions = np.concatenate(
        [np.arange(L, dtype=np.int32) for L in seq_lens])
    T = int(positions.shape[0])
    assert all(int(x.shape[0]) == T for x in xs)
    assert max(seq_lens) <= position_table.shape[0]

    # Tile the packed-token dimension; pad T to a multiple of the tile.
    tile_t = min(tile_t, _round_up(T, 8))
    T_pad = _round_up(T, tile_t)

    # Token ids (per level) and positions packed into one int32 [T_pad, L+1].
    idx = jnp.zeros((T_pad, num_levels + 1), dtype=jnp.int32)
    idx = idx.at[:T, :num_levels].set(
        jnp.stack([x.astype(jnp.int32) for x in xs], axis=1))
    idx = idx.at[:T, num_levels].set(jnp.asarray(positions))

    # Stack embedding tables into one [num_levels, V_max, d_content] buffer.
    v_max = max(int(t.shape[0]) for t in emb_tables)
    tables = jnp.zeros((num_levels, v_max, d_content), dtype=jnp.float32)
    for lvl, t in enumerate(emb_tables):
        tables = tables.at[lvl, :t.shape[0], :].set(t.astype(jnp.float32))

    has_extra = extra_content_annotations is not None
    if has_extra:
        extra_p = jnp.zeros((T_pad, d_content), dtype=jnp.float32)
        extra_p = extra_p.at[:T].set(
            extra_content_annotations.astype(jnp.float32))

    kernel = functools.partial(
        _mle_kernel, num_levels=num_levels, d_content=d_content,
        d_embedding=d_embedding, eps=float(eps), partitioned=partitioned,
        has_extra=has_extra)

    in_specs = [
        pl.BlockSpec((tile_t, num_levels + 1), lambda i: (i, 0)),
        pl.BlockSpec((num_levels, v_max, d_content), lambda i: (0, 0, 0)),
        pl.BlockSpec((position_table.shape[0], d_pos_width),
                     lambda i: (0, 0)),
    ]
    inputs = [idx, tables, position_table.astype(jnp.float32)]
    if has_extra:
        in_specs.append(pl.BlockSpec((tile_t, d_content), lambda i: (i, 0)))
        inputs.append(extra_p)
    in_specs += [
        pl.BlockSpec((1, d_embedding), lambda i: (0, 0)),
        pl.BlockSpec((1, d_embedding), lambda i: (0, 0)),
    ]
    inputs += [gamma.reshape(1, d_embedding).astype(jnp.float32),
               beta.reshape(1, d_embedding).astype(jnp.float32)]

    annotations, timing = pl.pallas_call(
        kernel,
        out_shape=(
            jax.ShapeDtypeStruct((T_pad, d_embedding), jnp.float32),
            jax.ShapeDtypeStruct((T_pad, d_pos_width), jnp.float32),
        ),
        grid_spec=pltpu.PrefetchScalarGridSpec(
            num_scalar_prefetch=0,
            grid=(T_pad // tile_t,),
            in_specs=in_specs,
            out_specs=[
                pl.BlockSpec((tile_t, d_embedding), lambda i: (i, 0)),
                pl.BlockSpec((tile_t, d_pos_width), lambda i: (i, 0)),
            ],
        ),
        compiler_params=pltpu.CompilerParams(
            dimension_semantics=("parallel",),
            vmem_limit_bytes=32 * 1024 * 1024),
    )(*inputs)

    return annotations[:T], timing[:T]


def _reference(xs, emb_tables, position_table, seq_lens, partitioned, gamma,
               beta, extra=None, eps=1e-3):
    content = sum(tbl[x] for x, tbl in zip(xs, emb_tables))
    if extra is not None:
        content = content + extra
    timing = jnp.concatenate([position_table[:L] for L in seq_lens], axis=0)
    if partitioned:
        ann = jnp.concatenate([content, timing], axis=1)
    else:
        ann = content + timing
    mu = jnp.mean(ann, axis=-1, keepdims=True)
    sigma = jnp.std(ann, axis=-1, keepdims=True, ddof=1)   # torch.std (unbiased)
    ln = (ann - mu) / (sigma + eps)
    ln = ln * gamma + beta
    return ln, timing


if __name__ == "__main__":
    key = jax.random.PRNGKey(0)
    k1, k2, k3, k4, k5, k6, k7, k8 = jax.random.split(key, 8)

    # Small shapes: batch of 2 packed sequences, 2 embedding levels.
    seq_lens = [9, 7]
    T = sum(seq_lens)                    # 16 packed tokens
    num_embeddings_list = [48, 12]       # word vocab, tag vocab
    d_embedding = 32
    d_positional = 16
    d_content = d_embedding - d_positional
    max_len = 64

    word_ids = jax.random.randint(k1, (T,), 0, num_embeddings_list[0],
                                  dtype=jnp.int32)
    tag_ids = jax.random.randint(k2, (T,), 0, num_embeddings_list[1],
                                 dtype=jnp.int32)
    xs = [word_ids, tag_ids]

    emb_tables = [
        jax.random.normal(k3, (num_embeddings_list[0], d_content), jnp.float32),
        jax.random.normal(k4, (num_embeddings_list[1], d_content), jnp.float32),
    ]
    position_table = jax.random.normal(k5, (max_len, d_positional), jnp.float32)
    extra = 0.1 * jax.random.normal(k6, (T, d_content), jnp.float32)

    gamma = 1.0 + 0.1 * jax.random.normal(k7, (d_embedding,), jnp.float32)
    beta = 0.05 * jax.random.normal(k8, (d_embedding,), jnp.float32)

    # Partitioned path (content ++ timing).
    ann, timing = multi_level_embedding(
        xs, emb_tables, position_table, seq_lens,
        partitioned=True, gamma=gamma, beta=beta,
        extra_content_annotations=extra)
    ann = jax.block_until_ready(ann)
    timing = jax.block_until_ready(timing)

    ref_ann, ref_timing = _reference(xs, emb_tables, position_table, seq_lens,
                                     True, gamma, beta, extra=extra)
    assert ann.shape == (T, d_embedding) and timing.shape == (T, d_positional)
    assert jnp.allclose(timing, ref_timing, atol=1e-6, rtol=1e-6)
    assert jnp.allclose(ann, ref_ann, atol=1e-5, rtol=1e-5)

    # Non-partitioned path (content + timing).
    emb_tables_full = [
        jax.random.normal(k3, (num_embeddings_list[0], d_embedding), jnp.float32),
        jax.random.normal(k4, (num_embeddings_list[1], d_embedding), jnp.float32),
    ]
    pos_table_full = jax.random.normal(k5, (max_len, d_embedding), jnp.float32)
    ann2, timing2 = multi_level_embedding(
        xs, emb_tables_full, pos_table_full, seq_lens,
        partitioned=False, gamma=gamma, beta=beta)
    ann2 = jax.block_until_ready(ann2)
    ref_ann2, ref_timing2 = _reference(xs, emb_tables_full, pos_table_full,
                                       seq_lens, False, gamma, beta)
    assert jnp.allclose(timing2, ref_timing2, atol=1e-6, rtol=1e-6)
    assert jnp.allclose(ann2, ref_ann2, atol=1e-5, rtol=1e-5)

    print("KERNEL_OK")
</pallas_src>

<mosaic_0001>
module attributes {stable_mosaic.version = 11 : i64} {
  func.func @_mle_kernel(%arg0: i32, %arg1: memref<16x3xi32, #tpu.memory_space<vmem>>, %arg2: memref<2x48x16xf32, #tpu.memory_space<vmem>>, %arg3: memref<64x16xf32, #tpu.memory_space<vmem>>, %arg4: memref<16x16xf32, #tpu.memory_space<vmem>>, %arg5: memref<1x32xf32, #tpu.memory_space<vmem>>, %arg6: memref<1x32xf32, #tpu.memory_space<vmem>>, %arg7: memref<16x32xf32, #tpu.memory_space<vmem>>, %arg8: memref<16x16xf32, #tpu.memory_space<vmem>>) attributes {dimension_semantics = [#tpu.dimension_semantics<parallel>], iteration_bounds = array<i64: 1>, scalar_prefetch = 0 : i64, scratch_operands = 0 : i64, tpu.core_type = #tpu.core_type<tc>, window_params = [{transform_indices = @transform_0, window_bounds = array<i64: 16, 3>}, {pipeline_mode = #tpu.pipeline_mode<synchronous>, transform_indices = @transform_1, window_bounds = array<i64: 2, 48, 16>}, {pipeline_mode = #tpu.pipeline_mode<synchronous>, transform_indices = @transform_2, window_bounds = array<i64: 64, 16>}, {transform_indices = @transform_3, window_bounds = array<i64: 16, 16>}, {pipeline_mode = #tpu.pipeline_mode<synchronous>, transform_indices = @transform_4, window_bounds = array<i64: 1, 32>}, {pipeline_mode = #tpu.pipeline_mode<synchronous>, transform_indices = @transform_5, window_bounds = array<i64: 1, 32>}, {transform_indices = @transform_6, window_bounds = array<i64: 16, 32>}, {transform_indices = @transform_7, window_bounds = array<i64: 16, 16>}]} {
    %0 = tpu.iota {dimensions = array<i32: 1>} : vector<16x48xi32>
    %cst = arith.constant 0.000000e+00 : f32
    %1 = vector.broadcast %cst : f32 to vector<16x16xf32>
    %c0 = arith.constant 0 : index
    %c0_0 = arith.constant 0 : index
    %2 = vector.load %arg1[%c0, %c0_0] : memref<16x3xi32, #tpu.memory_space<vmem>>, vector<16x1xi32>
    %3 = vector.broadcast %2 : vector<16x1xi32> to vector<16x48xi32>
    %4 = arith.cmpi eq, %0, %3 : vector<16x48xi32>
    %5 = arith.extui %4 : vector<16x48xi1> to vector<16x48xi32>
    %6 = arith.sitofp %5 : vector<16x48xi32> to vector<16x48xf32>
    %c0_1 = arith.constant 0 : index
    %c0_2 = arith.constant 0 : index
    %c0_3 = arith.constant 0 : index
    %7 = vector.load %arg2[%c0_1, %c0_2, %c0_3] : memref<2x48x16xf32, #tpu.memory_space<vmem>>, vector<1x48x16xf32>
    %8 = vector.shape_cast %7 : vector<1x48x16xf32> to vector<48x16xf32>
    %cst_4 = arith.constant dense<0.000000e+00> : vector<16x16xf32>
    %9 = tpu.matmul %6, %8, %cst_4 {dimension_numbers = #tpu.dot_dimension_numbers<[1], [0], [0], [1], [0, 0, 1, 1], [], []>} : vector<16x48xf32>, vector<48x16xf32>, vector<16x16xf32> -> vector<16x16xf32>
    %10 = arith.addf %1, %9 : vector<16x16xf32>
    %c0_5 = arith.constant 0 : index
    %c1 = arith.constant 1 : index
    %11 = vector.load %arg1[%c0_5, %c1] : memref<16x3xi32, #tpu.memory_space<vmem>>, vector<16x1xi32>
    %12 = vector.broadcast %11 : vector<16x1xi32> to vector<16x48xi32>
    %13 = arith.cmpi eq, %0, %12 : vector<16x48xi32>
    %14 = arith.extui %13 : vector<16x48xi1> to vector<16x48xi32>
    %15 = arith.sitofp %14 : vector<16x48xi32> to vector<16x48xf32>
    %c1_6 = arith.constant 1 : index
    %c0_7 = arith.constant 0 : index
    %c0_8 = arith.constant 0 : index
    %16 = vector.load %arg2[%c1_6, %c0_7, %c0_8] : memref<2x48x16xf32, #tpu.memory_space<vmem>>, vector<1x48x16xf32>
    %17 = vector.shape_cast %16 : vector<1x48x16xf32> to vector<48x16xf32>
    %cst_9 = arith.constant dense<0.000000e+00> : vector<16x16xf32>
    %18 = tpu.matmul %15, %17, %cst_9 {dimension_numbers = #tpu.dot_dimension_numbers<[1], [0], [0], [1], [0, 0, 1, 1], [], []>} : vector<16x48xf32>, vector<48x16xf32>, vector<16x16xf32> -> vector<16x16xf32>
    %19 = arith.addf %10, %18 : vector<16x16xf32>
    %c0_10 = arith.constant 0 : index
    %c0_11 = arith.constant 0 : index
    %20 = vector.load %arg4[%c0_10, %c0_11] : memref<16x16xf32, #tpu.memory_space<vmem>>, vector<16x16xf32>
    %21 = arith.addf %19, %20 : vector<16x16xf32>
    %c0_12 = arith.constant 0 : index
    %c2 = arith.constant 2 : index
    %22 = vector.load %arg1[%c0_12, %c2] : memref<16x3xi32, #tpu.memory_space<vmem>>, vector<16x1xi32>
    %23 = tpu.iota {dimensions = array<i32: 1>} : vector<16x64xi32>
    %24 = vector.broadcast %22 : vector<16x1xi32> to vector<16x64xi32>
    %25 = arith.cmpi eq, %23, %24 : vector<16x64xi32>
    %26 = arith.extui %25 : vector<16x64xi1> to vector<16x64xi32>
    %27 = arith.sitofp %26 : vector<16x64xi32> to vector<16x64xf32>
    %c0_13 = arith.constant 0 : index
    %c0_14 = arith.constant 0 : index
    %28 = vector.load %arg3[%c0_13, %c0_14] : memref<64x16xf32, #tpu.memory_space<vmem>>, vector<64x16xf32>
    %cst_15 = arith.constant dense<0.000000e+00> : vector<16x16xf32>
    %29 = tpu.matmul %27, %28, %cst_15 {dimension_numbers = #tpu.dot_dimension_numbers<[1], [0], [0], [1], [0, 0, 1, 1], [], []>} : vector<16x64xf32>, vector<64x16xf32>, vector<16x16xf32> -> vector<16x16xf32>
    %c0_16 = arith.constant 0 : index
    %c0_17 = arith.constant 0 : index
    %30 = vector.load %arg8[%c0_16, %c0_17] : memref<16x16xf32, #tpu.memory_space<vmem>>, vector<16x16xf32>
    tpu.vector_store %arg8[%c0_16, %c0_17], %29 {strides = array<i32>} : memref<16x16xf32, #tpu.memory_space<vmem>>, vector<16x16xf32>,
    %c0_18 = arith.constant 0 : index
    %c0_19 = arith.constant 0 : index
    %31 = vector.load %arg5[%c0_18, %c0_19] : memref<1x32xf32, #tpu.memory_space<vmem>>, vector<1x32xf32>
    %c0_20 = arith.constant 0 : index
    %c0_21 = arith.constant 0 : index
    %32 = vector.load %arg6[%c0_20, %c0_21] : memref<1x32xf32, #tpu.memory_space<vmem>>, vector<1x32xf32>
    %cst_22 = arith.constant dense<0.000000e+00> : vector<16xf32>
    %33 = vector.multi_reduction <add>, %21, %cst_22 [1] : vector<16x16xf32> to vector<16xf32>
    %34 = vector.shape_cast %33 : vector<16xf32> to vector<16x1xf32>
    %cst_23 = arith.constant dense<0.000000e+00> : vector<16xf32>
    %35 = vector.multi_reduction <add>, %29, %cst_23 [1] : vector<16x16xf32> to vector<16xf32>
    %36 = vector.shape_cast %35 : vector<16xf32> to vector<16x1xf32>
    %37 = arith.addf %34, %36 : vector<16x1xf32>
    %cst_24 = arith.constant 3.125000e-02 : f32
    %38 = vector.broadcast %cst_24 : f32 to vector<16x1xf32>
    %39 = arith.mulf %37, %38 : vector<16x1xf32>
    %40 = vector.broadcast %39 : vector<16x1xf32> to vector<16x16xf32>
    %41 = arith.subf %21, %40 : vector<16x16xf32>
    %42 = vector.broadcast %39 : vector<16x1xf32> to vector<16x16xf32>
    %43 = arith.subf %29, %42 : vector<16x16xf32>
    %44 = arith.mulf %41, %41 : vector<16x16xf32>
    %cst_25 = arith.constant dense<0.000000e+00> : vector<16xf32>
    %45 = vector.multi_reduction <add>, %44, %cst_25 [1] : vector<16x16xf32> to vector<16xf32>
    %46 = vector.shape_cast %45 : vector<16xf32> to vector<16x1xf32>
    %47 = arith.mulf %43, %43 : vector<16x16xf32>
    %cst_26 = arith.constant dense<0.000000e+00> : vector<16xf32>
    %48 = vector.multi_reduction <add>, %47, %cst_26 [1] : vector<16x16xf32> to vector<16xf32>
    %49 = vector.shape_cast %48 : vector<16xf32> to vector<16x1xf32>
    %50 = arith.addf %46, %49 : vector<16x1xf32>
    %cst_27 = arith.constant 0.0322580636 : f32
    %51 = vector.broadcast %cst_27 : f32 to vector<16x1xf32>
    %52 = arith.mulf %50, %51 : vector<16x1xf32>
    %53 = math.sqrt %52 : vector<16x1xf32>
    %cst_28 = arith.constant 1.000000e-03 : f32
    %54 = vector.broadcast %cst_28 : f32 to vector<16x1xf32>
    %55 = arith.addf %53, %54 : vector<16x1xf32>
    %cst_29 = arith.constant 1.000000e+00 : f32
    %56 = vector.broadcast %cst_29 : f32 to vector<16x1xf32>
    %57 = arith.divf %56, %55 : vector<16x1xf32>
    %58 = vector.broadcast %57 : vector<16x1xf32> to vector<16x16xf32>
    %59 = arith.mulf %41, %58 : vector<16x16xf32>
    %60 = vector.extract_strided_slice %31 {offsets = [0, 0], sizes = [1, 16], strides = [1, 1]} : vector<1x32xf32> to vector<1x16xf32>
    %61 = vector.broadcast %60 : vector<1x16xf32> to vector<16x16xf32>
    %62 = arith.mulf %59, %61 : vector<16x16xf32>
    %63 = vector.extract_strided_slice %32 {offsets = [0, 0], sizes = [1, 16], strides = [1, 1]} : vector<1x32xf32> to vector<1x16xf32>
    %64 = vector.broadcast %63 : vector<1x16xf32> to vector<16x16xf32>
    %65 = arith.addf %62, %64 : vector<16x16xf32>
    %c0_30 = arith.constant 0 : index
    %c0_31 = arith.constant 0 : index
    %66 = vector.load %arg7[%c0_30, %c0_31] : memref<16x32xf32, #tpu.memory_space<vmem>>, vector<16x16xf32>
    tpu.vector_store %arg7[%c0_30, %c0_31], %65 {strides = array<i32>} : memref<16x32xf32, #tpu.memory_space<vmem>>, vector<16x16xf32>,
    %67 = vector.broadcast %57 : vector<16x1xf32> to vector<16x16xf32>
    %68 = arith.mulf %43, %67 : vector<16x16xf32>
    %69 = vector.extract_strided_slice %31 {offsets = [0, 16], sizes = [1, 16], strides = [1, 1]} : vector<1x32xf32> to vector<1x16xf32>
    %70 = vector.broadcast %69 : vector<1x16xf32> to vector<16x16xf32>
    %71 = arith.mulf %68, %70 : vector<16x16xf32>
    %72 = vector.extract_strided_slice %32 {offsets = [0, 16], sizes = [1, 16], strides = [1, 1]} : vector<1x32xf32> to vector<1x16xf32>
    %73 = vector.broadcast %72 : vector<1x16xf32> to vector<16x16xf32>
    %74 = arith.addf %71, %73 : vector<16x16xf32>
    %c0_32 = arith.constant 0 : index
    %c16 = arith.constant 16 : index
    %75 = vector.load %arg7[%c0_32, %c16] : memref<16x32xf32, #tpu.memory_space<vmem>>, vector<16x16xf32>
    tpu.vector_store %arg7[%c0_32, %c16], %74 {strides = array<i32>} : memref<16x32xf32, #tpu.memory_space<vmem>>, vector<16x16xf32>,
    return
  }
  func.func @transform_0(%arg0: i32) -> (i32, i32) {
    %c0_i32 = arith.constant 0 : i32
    %c0_i32_0 = arith.constant 0 : i32
    return %arg0, %c0_i32 : i32, i32
  }
  func.func @transform_1(%arg0: i32) -> (i32, i32, i32) {
    %c0_i32 = arith.constant 0 : i32
    %c0_i32_0 = arith.constant 0 : i32
    %c0_i32_1 = arith.constant 0 : i32
    %c0_i32_2 = arith.constant 0 : i32
    return %c0_i32, %c0_i32_0, %c0_i32_1 : i32, i32, i32
  }
  func.func @transform_2(%arg0: i32) -> (i32, i32) {
    %c0_i32 = arith.constant 0 : i32
    %c0_i32_0 = arith.constant 0 : i32
    %c0_i32_1 = arith.constant 0 : i32
    return %c0_i32, %c0_i32_0 : i32, i32
  }
  func.func @transform_3(%arg0: i32) -> (i32, i32) {
    %c0_i32 = arith.constant 0 : i32
    %c0_i32_0 = arith.constant 0 : i32
    return %arg0, %c0_i32 : i32, i32
  }
  func.func @transform_4(%arg0: i32) -> (i32, i32) {
    %c0_i32 = arith.constant 0 : i32
    %c0_i32_0 = arith.constant 0 : i32
    %c0_i32_1 = arith.constant 0 : i32
    return %c0_i32, %c0_i32_0 : i32, i32
  }
  func.func @transform_5(%arg0: i32) -> (i32, i32) {
    %c0_i32 = arith.constant 0 : i32
    %c0_i32_0 = arith.constant 0 : i32
    %c0_i32_1 = arith.constant 0 : i32
    return %c0_i32, %c0_i32_0 : i32, i32
  }
  func.func @transform_6(%arg0: i32) -> (i32, i32) {
    %c0_i32 = arith.constant 0 : i32
    %c0_i32_0 = arith.constant 0 : i32
    return %arg0, %c0_i32 : i32, i32
  }
  func.func @transform_7(%arg0: i32) -> (i32, i32) {
    %c0_i32 = arith.constant 0 : i32
    %c0_i32_0 = arith.constant 0 : i32
    return %arg0, %c0_i32 : i32, i32
  }
}

</mosaic_0001>

<bundles_post_ra>
// kernel: tpu_custom_call.1
= control target key start
LH: loop header
LB: loop body
LE: loop exit
PB: predicated region body
PF: predicated region fallthrough
CT: control target
= control target key end

     0   :  { %13 = vsyncpa [#allocation3], 0  ;;  %v684_v2 = vmov 1   ;;  %v685_v3 = vmov 0   ;;  %s883_s0 = inlined_call_operand.vmem [shape: s32[16,3], index: 0, kind: input, shape index: {}]   ;;  %s884_s1 = inlined_call_operand.vmem [shape: f32[2,48,16], index: 1, kind: input, shape index: {}]   ;;  %s885_s2 = inlined_call_operand.vmem [shape: f32[64,16], index: 2, kind: input, shape index: {}]   ;;  %s886_s3 = inlined_call_operand.vmem [shape: f32[16,16], index: 3, kind: input, shape index: {}]   ;;  %s887_s4 = inlined_call_operand.vmem [shape: f32[1,32], index: 4, kind: input, shape index: {}]   ;;  %s888_s5 = inlined_call_operand.vmem [shape: f32[1,32], index: 5, kind: input, shape index: {}]   ;;  %s889_s6 = inlined_call_operand.hbm [shape: f32[16,32], index: 6, kind: output, shape index: {0}]   ;;  %s890_s7 = inlined_call_operand.hbm [shape: f32[16,16], index: 7, kind: output, shape index: {1}]  }
   0x1   :  { %v29_v0 = vld [vmem:[%s883_s0] sm:$0xff]  ;;  %v481_v1 = vld [vmem:[%s884_s1 + $0x30] sm:$0xff]  ;;  %624 = vset.pattern.permute.xlu0 %v684_v2  ;;  %625 = vset.pattern.permute.xlu1 %v685_v3  ;;  %v482_v4 = vld [vmem:[%s884_s1 + $0x38] sm:$0xff] }
   0x2   :  { %v483_v5 = vld [vmem:[%s884_s1 + $0x40] sm:$0xff]  ;;  %v484_v6 = vld [vmem:[%s884_s1 + $0x48] sm:$0xff]  ;;  %50 = vperm.xlu0 %624, %v29_v0   ;;  %32 = vperm.xlu1 %625, %v29_v0   ;;  %v572_v7 = vpack.c.bf16 %v482_v4, %v481_v1 }
   0x3   :  { %14 = vsyncpa [#allocation5], 0  ;;  %v30_v8 = vld [vmem:[%s883_s0 + $0x8] sm:$0xff]  ;;  %v576_v9 = vpack.c.bf16 %v484_v6, %v483_v5  ;;  %v485_v10 = vld [vmem:[%s884_s1 + $0x50] sm:$0xff]  ;;  %v686_v18 = vmov 2   ;;  %v27_v29 = vlaneseq  ;;  %vm68_vm0 = vcmask 392192  }
   0x4   :  { %573 = vmatprep.subr.bf16.mxu0 %v572_v7  ;;  %v486_v11 = vld [vmem:[%s884_s1 + $0x58] sm:$0xff]  ;;  %v247_v12 = vld [vmem:[%s885_s2] sm:$0xff]  ;;  %v248_v13 = vld [vmem:[%s885_s2 + $0x8] sm:$0xff]  ;;  %v687_v33 = vmov 0.0   ;;  %vm255_vm4 = vcmask 523264   ;;  %vm337_vm8 = vcmask 130048  }
   0x5   :  { %575 = vmatpush3.bf16.msra.mxu0 %v572_v7  ;;  %v596_v14 = vpack.c.bf16 %v248_v13, %v247_v12  ;;  %v43_v15 = vld [vmem:[%s884_s1] sm:$0xff]  ;;  %v44_v16 = vld [vmem:[%s884_s1 + $0x8] sm:$0xff]  ;;  %v580_v17 = vpack.c.bf16 %v486_v11, %v485_v10  ;;  %v249_v20 = vld [vmem:[%s885_s2 + $0x10] sm:$0xff]  ;;  %v28_v30 = vand.u32 127, %v27_v29  ;;  %s688_s23 = smov 112  }
   0x6   :  { %53 = vperm.xlu0 %624, %v30_v8   ;;  %35 = vperm.xlu1 %625, %v30_v8   ;;  %v584_v19 = vpack.c.bf16 %v44_v16, %v43_v15  ;;  %v250_v21 = vld [vmem:[%s885_s2 + $0x18] sm:$0xff]  ;;  %v251_v23 = vld [vmem:[%s885_s2 + $0x20] sm:$0xff]  ;;  %v252_v24 = vld [vmem:[%s885_s2 + $0x28] sm:$0xff] }
   0x7   :  { %577 = vmatprep.subr.bf16.mxu0 %v576_v9  ;;  %597 = vmatprep.subr.bf16.mxu1 %v596_v14  ;;  %v600_v22 = vpack.c.bf16 %v250_v21, %v249_v20  ;;  %v604_v25 = vpack.c.bf16 %v252_v24, %v251_v23  ;;  %v253_v26 = vld [vmem:[%s885_s2 + $0x30] sm:$0xff]  ;;  %v254_v27 = vld [vmem:[%s885_s2 + $0x38] sm:$0xff]  ;;  %v47_v42 = vld [vmem:[%s884_s1 + $0x20] sm:$0xff] }
   0x8   :  { %599 = vmatpush3.bf16.msra.mxu1 %v596_v14  ;;  %v608_v28 = vpack.c.bf16 %v254_v27, %v253_v26  ;;  %v45_v35 = vld [vmem:[%s884_s1 + $0x10] sm:$0xff]  ;;  %v46_v36 = vld [vmem:[%s884_s1 + $0x18] sm:$0xff]  ;;  %v48_v43 = vld [vmem:[%s884_s1 + $0x28] sm:$0xff] }
   0x9   :  { %579 = vmatpush3.bf16.msra.mxu0 %v576_v9  ;;  %601 = vmatprep.subr.bf16.mxu1 %v600_v22  ;;  %v588_v39 = vpack.c.bf16 %v46_v36, %v45_v35  ;;  %v592_v44 = vpack.c.bf16 %v48_v43, %v47_v42  ;;  %v232_v52 = vld [vmem:[%s886_s3 + $0x8] sm:$0xff]  ;;  %v231_v53 = vld [vmem:[%s886_s3] sm:$0xff] }
   0xa   :  { %626 = vset.pattern.permute.xlu0 %v686_v18  ;;  %627 = vset.pattern.permute.xlu1 %v686_v18  ;;  %v839_v18 = vld [vmem:[%s888_s5] ss:$0 sm:$0xff] }
   0xb   :  { %236 = vperm.xlu0 %626, %v29_v0   ;;  %239 = vperm.xlu1 %627, %v30_v8  }
   0xc   :  { %581 = vmatprep.subr.bf16.mxu0 %v580_v17  ;;  %603 = vmatpush3.bf16.msra.mxu1 %v600_v22 }
   0xd   :  { %583 = vmatpush3.bf16.msra.mxu0 %v580_v17  ;;  %605 = vmatprep.subr.bf16.mxu1 %v604_v25 }
   0xe   :  { %585 = vmatprep.subr.bf16.mxu0 %v584_v19 }
  0x10   :  { %607 = vmatpush3.bf16.msra.mxu1 %v604_v25 }
  0x11   :  { %609 = vmatprep.subr.bf16.mxu1 %v608_v28 }
  0x14   :  { %611 = vmatpush3.bf16.msra.mxu1 %v608_v28 }
  0x81   :  { %v51_v31 = vpop.permute.xlu0 %50  ;;  %v33_v32 = vpop.permute.xlu1 %32 }
  0x82   :  { %vm55_vm1 = vcmp.eq.s32.totalorder %v28_v30, %v51_v31  ;;  %vm37_vm2 = vcmp.eq.s32.totalorder %v28_v30, %v33_v32 }
  0x83   :  { %v479_v34 = vsel %vm55_vm1, 1.0, %v687_v33  ;;  %v477_v38 = vsel %vm37_vm2, 1.0, %v687_v33 }
  0x84   :  { %535 = vmatprep.mubr.msk.f32.mxu0 %vm68_vm0, %v479_v34 }
  0x85   :  { %v54_v37 = vpop.permute.xlu0 %53  ;;  %v36_v40 = vpop.permute.xlu1 %35 }
  0x86   :  { %vm56_vm3 = vcmp.eq.s32.totalorder %v28_v30, %v54_v37  ;;  %vm38_vm7 = vcmp.eq.s32.totalorder %v28_v30, %v36_v40 }
  0x87   :  { %v480_v41 = vsel %vm56_vm3, 1.0, %v687_v33  ;;  %v478_v49 = vsel %vm38_vm7, 1.0, %v687_v33 }
  0x88   :  { %536 = vmatmul.mubr.msk.f32.vlgmr.msra.gmra.mrb[0].mxu0 %vm68_vm0, %v480_v41 }
  0x89   :  { %587 = vmatpush3.bf16.msra.mxu0 %v584_v19  ;;  %550 = vmatprep.mubr.msk.f32.mxu0 %vm68_vm0, %v477_v38  ;;  %v495_v19 = vld [vmem:[%s887_s4] ss:$0 sm:$0xff]  ;;  %s689_s4 = smov [#allocation4]  }
  0x8a   :  { %589 = vmatprep.subr.bf16.mxu0 %v588_v39  ;;  %v237_v45 = vpop.permute.xlu0 %236  ;;  %v240_v46 = vpop.permute.xlu1 %239  ;;  %s462_s5 = sshll.u32 %s689_s4, 4  ;;  %s463_s5 = int_to_ptr.vmem [resolvable:$true] %s462_s5 }
  0x8b   :  { %vm241_vm5 = vcmp.eq.s32.totalorder %v28_v30, %v237_v45  ;;  %vm242_vm6 = vcmp.eq.s32.totalorder %v28_v30, %v240_v46  ;;  %s636_s26 = scalar_lea.vmem %s463_s5, 256  ;;  %p641_p1 = scmp.lt.s32.totalorder %s463_s5, %s463_s5 }
  0x8c   :  { %v492_v47 = vsel %vm242_vm6, 1.0, %v687_v33  ;;  %v491_v48 = vsel %vm241_vm5, 1.0, %v687_v33  ;;  %p637_p0 = scmp.ne.s32.totalorder %s463_s5, %s636_s26  ;;  %p642_p2 = scmp.lt.s32.totalorder %s636_s26, %s636_s26 }
  0x8d   :  { %591 = vmatpush3.bf16.msra.mxu0 %v588_v39  ;;  %569 = vmatprep.mubr.msk.f32.mxu1 %vm255_vm4, %v491_v48 }
  0x8e   :  { %593 = vmatprep.subr.bf16.mxu0 %v592_v44  ;;  %570 = vmatmul.mubr.msk.f32.vlgmr.msra.gmra.mrb[0].mxu1 %vm255_vm4, %v492_v47  ;;  %p643_p3 = por %p642_p2, %p641_p1 }
  0x90   :  { %p644_p4 = pnand %p643_p3, %p637_p0 }
  0x91   :  { %595 = vmatpush3.bf16.msra.mxu0 %v592_v44 }
  0x94   :  { %551 = vmatmul.mubr.msk.f32.vlgmr.msra.gmra.mrb[0].mxu0 %vm68_vm0, %v478_v49 }
 0x161   :  { %v571_v50 = vpop.f32.mrb[0].mxu1 }
 0x162   :  { %339 = vst.msk [vmem:[#allocation4 + $0x8] sm:$0xff] %vm337_vm8, %v571_v50  ;;  %v328_v51 = vpop.f32.mrb[1].mxu1  ;;  %v351_v61 = vsel %vm337_vm8, %v571_v50, 0.0 }
 0x163   :  { %338 = vst.msk [vmem:[#allocation4] sm:$0xff] %vm337_vm8, %v328_v51  ;;  %v348_v60 = vsel %vm337_vm8, %v328_v51, 0.0 }
 0x167   :  { %v552_v54 = vpop.f32.mrb[0].mxu0 }
 0x168   :  { %v234_v55 = vadd.f32 %v552_v54, %v232_v52  ;;  %v222_v56 = vpop.f32.mrb[1].mxu0 }
 0x169   :  { %v233_v57 = vadd.f32 %v231_v53, %v222_v56 }
 0x16a   :  { %v345_v58 = vsel %vm337_vm8, %v234_v55, 0.0 }
 0x16b   :  { %346 = vadd.xlane.f32.xlu0 %v345_v58  ;;  %v342_v59 = vsel %vm337_vm8, %v233_v57, 0.0 }
 0x16c   :  { %343 = vadd.xlane.f32.xlu1 %v342_v59 }
 0x16f   :  { %349 = vadd.xlane.f32.xlu0 %v348_v60 }
 0x170   :  { %352 = vadd.xlane.f32.xlu1 %v351_v61 }
 0x1f8   :  { %v347_v62 = vpop.xlane.xlu0 %346 }
 0x1f9   :  { %v344_v63 = vpop.xlane.xlu1 %343 }
 0x1fc   :  { %v350_v0 = vpop.xlane.xlu0 %349 }
 0x1fd   :  { %v354_v1 = vadd.f32 %v350_v0, %v344_v63  ;;  %v353_v2 = vpop.xlane.xlu1 %352 }
 0x1fe   :  { %v355_v3 = vadd.f32 %v353_v2, %v347_v62 }
 0x1ff   :  { %v356_v4 = vmul.f32 0.03125, %v354_v1 }
 0x200   :  { %v357_v5 = vmul.f32 0.03125, %v355_v3 }
 0x201   :  { %v816_v6 = vsub.f32 %v233_v57, %v356_v4  ;;  %v818_v7 = vsub.f32 %v328_v51, %v356_v4 }
 0x202   :  { %v820_v8 = vsub.f32 %v234_v55, %v357_v5  ;;  %v822_v9 = vsub.f32 %v571_v50, %v357_v5 }
 0x203   :  { %v362_v10 = vmul.f32 %v816_v6, %v816_v6  ;;  %v370_v13 = vmul.f32 %v818_v7, %v818_v7 }
 0x204   :  { %v363_v11 = vmul.f32 %v820_v8, %v820_v8  ;;  %v371_v15 = vmul.f32 %v822_v9, %v822_v9 }
 0x205   :  { %v364_v12 = vsel %vm337_vm8, %v362_v10, 0.0  ;;  %v372_v16 = vsel %vm337_vm8, %v370_v13, 0.0 }
 0x206   :  { %365 = vadd.xlane.f32.xlu0 %v364_v12  ;;  %v367_v14 = vsel %vm337_vm8, %v363_v11, 0.0  ;;  %v375_v17 = vsel %vm337_vm8, %v371_v15, 0.0 }
 0x207   :  { %368 = vadd.xlane.f32.xlu1 %v367_v14 }
 0x20a   :  { %373 = vadd.xlane.f32.xlu0 %v372_v16 }
 0x20b   :  { %376 = vadd.xlane.f32.xlu1 %v375_v17 }
 0x21c   :  { %429 = vrot.lane.b32.xlu1 %v839_v18, %s688_s23 }
 0x220   :  { %424 = vrot.lane.b32.xlu0 %v495_v19, %s688_s23 }
 0x293   :  { %v366_v20 = vpop.xlane.xlu0 %365 }
 0x294   :  { %v369_v21 = vpop.xlane.xlu1 %368 }
 0x297   :  { %v374_v22 = vpop.xlane.xlu0 %373 }
 0x298   :  { %v378_v23 = vadd.f32 %v374_v22, %v366_v20  ;;  %v377_v24 = vpop.xlane.xlu1 %376 }
 0x299   :  { %v379_v25 = vadd.f32 %v377_v24, %v369_v21 }
 0x29a   :  { %v380_v26 = vmul.f32 0.032258064, %v378_v23 }
 0x29b   :  { %v381_v27 = vmul.f32 0.032258064, %v379_v25 }
 0x29c   :  { %628 = vrsqrt.f32 %v380_v26  ;;  %vm384_vm9 = vcmp.eq.f32.partialorder %v380_v26, inf  ;;  %v387_v31 = vand.u32 2147483648, %v380_v26  ;;  %vm386_vm11 = vcmp.eq.f32.partialorder %v380_v26, 0.0 }
 0x29d   :  { %630 = vrsqrt.f32 %v381_v27  ;;  %vm391_vm10 = vcmp.eq.f32.partialorder %v381_v27, inf  ;;  %v394_v33 = vand.u32 2147483648, %v381_v27  ;;  %vm393_vm12 = vcmp.eq.f32.partialorder %v381_v27, 0.0 }
 0x2a6   :  { %v629_v28 = vpop.eup %628 }
 0x2a7   :  { %v631_v29 = vpop.eup %630  ;;  %v383_v30 = vmul.f32 %v629_v28, %v380_v26 }
 0x2a8   :  { %v390_v32 = vmul.f32 %v631_v29, %v381_v27 }
 0x2a9   :  { %v385_v34 = vsel %vm384_vm9, %v380_v26, %v383_v30 }
 0x2aa   :  { %v388_v35 = vsel %vm386_vm11, %v387_v31, %v385_v34  ;;  %v392_v36 = vsel %vm391_vm10, %v381_v27, %v390_v32 }
 0x2ab   :  { %v396_v37 = vadd.f32 0.001, %v388_v35  ;;  %v395_v38 = vsel %vm393_vm12, %v394_v33, %v392_v36 }
 0x2ac   :  { %v397_v39 = vadd.f32 0.001, %v395_v38 }
 0x2ad   :  { %632 = vrcp.f32 %v396_v37 }
 0x2ae   :  { %634 = vrcp.f32 %v397_v39 }
 0x2af   :  { %647 = shalt.err (!%p644_p4)
}
 0x2b0   :  { %s648_s29 = scalar_lea.hbm %s890_s7, 256 }
 0x2b1   :  { %p649_p5 = scmp.ne.s32.totalorder %s890_s7, %s648_s29  ;;  %p652_p6 = scmp.lt.u32.totalorder %s648_s29, %s890_s7 }
 0x2b3   :  { %p654_p7 = pnand %p652_p6, %p649_p5 }
 0x2b5   :  { %657 = shalt.err (!%p654_p7)
}
 0x2b6   :  { %s690_s11 = smov 128   ;;  %s691_s12 = smov 8   ;;  %v425_v41 = vpop.permute.xlu0 %424  ;;  %v430_v46 = vpop.permute.xlu1 %429  ;;  %vm442_vm13 = vcmask 261248  }
 0x2b7   :  { %468 = dma.vmem_to_hbm [thread:$0]  %s463_s5, 256, %s890_s7, [#allocation5], %s690_s11, %s690_s11, %s691_s12   ;;  %v633_v40 = vpop.eup %632 }
 0x2b8   :  { %v635_v42 = vpop.eup %634  ;;  %v422_v43 = vmul.f32 %v633_v40, %v818_v7  ;;  %v402_v44 = vmul.f32 %v633_v40, %v816_v6  ;;  %s692_s7 = smov 16   ;;  %s693_s15 = smov [#allocation2]  }
 0x2b9   :  { %v423_v45 = vmul.f32 %v635_v42, %v822_v9  ;;  %v403_v47 = vmul.f32 %v635_v42, %v820_v8  ;;  %s450_s16 = sshll.u32 %s693_s15, 4  ;;  %s451_s16 = int_to_ptr.vmem [resolvable:$true] %s450_s16 }
 0x2ba   :  { %v427_v48 = vmul.f32 %v425_v41, %v422_v43  ;;  %v410_v49 = vmul.f32 %v495_v19, %v402_v44  ;;  %s658_s2 = scalar_lea.vmem %s451_s16, 256  ;;  %p663_p9 = scmp.lt.s32.totalorder %s451_s16, %s451_s16 }
 0x2bb   :  { %v428_v50 = vmul.f32 %v425_v41, %v423_v45  ;;  %v411_v51 = vmul.f32 %v495_v19, %v403_v47  ;;  %p659_p8 = scmp.ne.s32.totalorder %s451_s16, %s658_s2  ;;  %p664_p10 = scmp.lt.s32.totalorder %s658_s2, %s658_s2 }
 0x2bc   :  { %v432_v52 = vadd.f32 %v430_v46, %v427_v48  ;;  %v418_v53 = vadd.f32 %v839_v18, %v410_v49 }
 0x2bd   :  { %v433_v54 = vadd.f32 %v430_v46, %v428_v50  ;;  %v419_v55 = vadd.f32 %v839_v18, %v411_v51  ;;  %p665_p11 = por %p664_p10, %p663_p9 }
 0x2be   :  { %436 = vrot.lane.b32.xlu1 %v432_v52, %s692_s7  ;;  %420 = vst.msk [vmem:[#allocation2] sm:$0xff] %vm337_vm8, %v418_v53 }
 0x2bf   :  { %438 = vrot.lane.b32.xlu0 %v433_v54, %s692_s7  ;;  %421 = vst.msk [vmem:[#allocation2 + $0x8] sm:$0xff] %vm337_vm8, %v419_v55  ;;  %p666_p12 = pnand %p665_p11, %p659_p8 }
 0x330   :  { %v437_v56 = vpop.permute.xlu1 %436 }
 0x331   :  { %443 = vst.msk [vmem:[#allocation2] sm:$0xff] %vm442_vm13, %v437_v56  ;;  %v439_v57 = vpop.permute.xlu0 %438 }
 0x332   :  { %444 = vst.msk [vmem:[#allocation2 + $0x8] sm:$0xff] %vm442_vm13, %v439_v57 }
 0x333   :  { %669 = shalt.err (!%p666_p12)
}
 0x334   :  { %s670_s19 = scalar_lea.hbm %s889_s6, 256 }
 0x335   :  { %p671_p13 = scmp.ne.s32.totalorder %s889_s6, %s670_s19  ;;  %p674_p0 = scmp.lt.u32.totalorder %s670_s19, %s889_s6 }
 0x337   :  { %p676_p1 = pnand %p674_p0, %p671_p13 }
 0x339   :  { %679 = shalt.err (!%p676_p1)
}
 0x33a   :  { %456 = dma.vmem_to_hbm [thread:$0]  %s451_s16, 256, %s889_s6, [#allocation3], %s690_s11, %s690_s11, %s691_s12  }
 0x33b   :  { %680 = dma.done.wait [#allocation3], 256  }
 0x33c   :  { %681 = vsyncadd [#allocation3], 4294967040 }
 0x33d   :  { %682 = dma.done.wait [#allocation5], 256  }
 0x33e   :  { %683 = vsyncadd [#allocation5], 4294967040 }
 0x33f   :  { %475 = vsyncpa [#allocation3], 1 }
 0x340   :  { %476 = vsyncpa [#allocation5], 1 }

</bundles_post_ra>
